<compile_context>
chip_gen: v7x
topology: tpu7x:2x2x1
jax: 0.10.0
libtpu: 0.0.40
codegen_flags: <defaults>
</compile_context>

<pallas_src>
import math

import jax
import jax.numpy as jnp
from jax.experimental import pallas as pl
from jax.experimental.pallas import tpu as pltpu


# ----------------------------------------------------------------------------
# Helpers
# ----------------------------------------------------------------------------

def _round_up(x, m):
    return ((x + m - 1) // m) * m


def _tile_1d(n, base, max_tile):
    """Pick (tile, padded_extent): tile is a multiple of `base`, <= `max_tile`,
    and divides padded_extent >= n.  Prefers an exact divisor of the
    base-rounded extent (minimal zero padding); falls back to padding up to
    the target tile when only tiny divisors exist."""
    n_b = _round_up(n, base)
    if n_b <= max_tile:
        return n_b, n_b
    for t in range(max_tile, base - 1, -base):
        if n_b % t == 0:
            if 4 * t >= max_tile:          # accept divisors within 4x of target
                return t, n_b
            break
    return max_tile, _round_up(n, max_tile)


def _div_tile(dim, max_tile):
    """Largest multiple of 128 <= max_tile dividing `dim` (dim % 128 == 0)."""
    t = (min(max_tile, dim) // 128) * 128
    while dim % t != 0:
        t -= 128
    return t


def _pad2(a, rows, cols):
    r, c = a.shape
    if (r, c) == (rows, cols):
        return a
    return jnp.pad(a, ((0, rows - r), (0, cols - c)))


def _device_plan():
    """(vmem_budget_bytes, tensorcores_per_chip) for the local TPU generation."""
    try:
        kind = jax.devices()[0].device_kind.lower()
    except Exception:                                   # pragma: no cover
        kind = ""
    if "v7" in kind:            # 64 MiB physical VMEM per core, 2 TCs per chip
        return 40 * 1024 * 1024, 2
    if "v5" in kind or "v6" in kind:     # 128 MiB physical VMEM, 1 TC per chip
        return 64 * 1024 * 1024, 1
    return 32 * 1024 * 1024, 1           # unknown generation: stay conservative


# ----------------------------------------------------------------------------
# Wrapper (kernels are closures so they can capture tile sizes / flags)
# ----------------------------------------------------------------------------

def graph_convolution(x, weight, adj, bias=None, *, use_bf16=False):
    """Pallas GCN layer forward: adj @ (x @ weight) [+ bias].

    x:      [N, in_features]            float32
    weight: [in_features, out_features] float32
    adj:    [N, N]                      float32 (dense adjacency)
    bias:   [out_features] or None
    use_bf16: cast MXU inputs (adj/x/W/support) to bf16, accumulate in f32.
              Off by default to match the f32 PyTorch module's numerics.
    returns [N, out_features] float32
    """
    n, in_f = x.shape
    in_f2, out_f = weight.shape
    assert in_f == in_f2
    assert adj.shape == (n, n)
    has_bias = bias is not None

    cdtype = jnp.bfloat16 if use_bf16 else jnp.float32
    itemsize = jnp.dtype(cdtype).itemsize
    budget, n_cores = _device_plan()

    # Lane-dense feature dims.
    # TODO(synk): round to 256 instead when compute-bound on v6e/v7x (256x256
    # MXU); irrelevant while adj-HBM-bound.
    in_fp = _round_up(in_f, 128)
    out_fp = _round_up(out_f, 128)

    # adj (row, K) tiling; K padded only to a multiple of 128, tk divides n_cp.
    tm, n_rp = _tile_1d(n, 8, 512)
    tk, n_cp = _tile_1d(n, 128, 1024)

    # v7x: guarantee >= 2 row tiles so both TensorCores get grid work.
    if n_cores > 1 and n_rp // tm < n_cores and n_rp > 8 * n_cores:
        tm = _round_up(-(-n_rp // n_cores), 8)
        n_rp = _round_up(n, tm)

    grid = (n_rp // tm, n_cp // tk)

    # ---- VMEM budget (bytes); streamed operands counted double-buffered ----
    adj_tile_b = 2 * tm * tk * itemsize
    out_tile_b = 2 * tm * out_fp * 4
    bias_b = 2 * out_fp * 4 if has_bias else 0
    w_res_b = 2 * in_fp * out_fp * itemsize
    acc_a_b = tm * in_fp * 4
    x_res_b = 2 * n_cp * in_fp * itemsize
    x_strm_b = 2 * tk * in_fp * itemsize
    s_res_b = 2 * n_cp * out_fp * itemsize

    def fits(*parts):
        return sum(parts) <= budget

    # Path A fuses (adj @ x) @ W with W resident; cheaper when in_f <= out_f
    # (the O(N^2) term contracts against the smaller feature dim).  Falls back
    # to Path B (support first, fully tiled) whenever resident W would not fit.
    path_a = (in_f <= out_f) and fits(
        adj_tile_b, w_res_b, acc_a_b, out_tile_b, bias_b, x_strm_b)

    # ---- pad + cast operands (exact: zero rows/cols contribute nothing) ----
    adj_p = _pad2(adj.astype(cdtype), n_rp, n_cp)
    x_p = _pad2(x.astype(cdtype), n_cp, in_fp)
    w_p = _pad2(weight.astype(cdtype), in_fp, out_fp)
    b_p = (_pad2(bias.astype(jnp.float32).reshape(1, out_f), 1, out_fp)
           if has_bias else None)

    cparams = pltpu.CompilerParams(
        dimension_semantics=("parallel", "arbitrary"),
        vmem_limit_bytes=budget)

    if path_a:
        # ---- Path A: out = (adj @ x) @ W + b, single fused pass ------------
        x_resident = fits(adj_tile_b, w_res_b, acc_a_b, out_tile_b, bias_b,
                          x_res_b)

        def kernel_a(adj_ref, x_ref, w_ref, *rest):
            if has_bias:
                b_ref, out_ref, acc_ref = rest
            else:
                out_ref, acc_ref = rest
            k = pl.program_id(1)

            @pl.when(k == 0)
            def _():
                acc_ref[...] = jnp.zeros_like(acc_ref)

            if x_resident:      # whole x lives in VMEM; slice the K slab here
                x_blk = x_ref[pl.ds(pl.multiple_of(k * tk, 128), tk), :]
            else:
                x_blk = x_ref[...]
            acc_ref[...] += jnp.dot(adj_ref[...], x_blk,
                                    preferred_element_type=jnp.float32)

            @pl.when(k == pl.num_programs(1) - 1)
            def _():
                out = jnp.dot(acc_ref[...].astype(w_ref.dtype), w_ref[...],
                              preferred_element_type=jnp.float32)
                if has_bias:
                    out = out + b_ref[...]
                out_ref[...] = out.astype(out_ref.dtype)

        x_spec = (pl.BlockSpec((n_cp, in_fp), lambda i, k: (0, 0))
                  if x_resident
                  else pl.BlockSpec((tk, in_fp), lambda i, k: (k, 0)))
        in_specs = [pl.BlockSpec((tm, tk), lambda i, k: (i, k)),
                    x_spec,
                    pl.BlockSpec((in_fp, out_fp), lambda i, k: (0, 0))]
        args = [adj_p, x_p, w_p]
        if has_bias:
            in_specs.append(pl.BlockSpec((1, out_fp), lambda i, k: (0, 0)))
            args.append(b_p)

        out_p = pl.pallas_call(
            kernel_a,
            out_shape=jax.ShapeDtypeStruct((n_rp, out_fp), jnp.float32),
            grid_spec=pltpu.PrefetchScalarGridSpec(
                num_scalar_prefetch=0,
                grid=grid,
                in_specs=in_specs,
                out_specs=pl.BlockSpec((tm, out_fp), lambda i, k: (i, 0)),
                scratch_shapes=[pltpu.VMEM((tm, in_fp), jnp.float32)]),
            compiler_params=cparams,
            cost_estimate=pl.CostEstimate(
                flops=2 * n_rp * n_cp * in_fp + 2 * n_rp * in_fp * out_fp,
                transcendentals=0,
                bytes_accessed=(n_rp * n_cp + n_cp * in_fp
                                + in_fp * out_fp) * itemsize
                               + n_rp * out_fp * 4),
        )(*args)
    else:
        # ---- Path B pass 1: support = x @ W (fully tiled (i,j,k) matmul) ---
        tms = _div_tile(n_cp, 512)
        tns = _div_tile(out_fp, 512)
        tks = _div_tile(in_fp, 512)

        def support_kernel(x_ref, w_ref, s_ref, acc_ref):
            kk = pl.program_id(2)

            @pl.when(kk == 0)
            def _():
                acc_ref[...] = jnp.zeros_like(acc_ref)

            acc_ref[...] += jnp.dot(x_ref[...], w_ref[...],
                                    preferred_element_type=jnp.float32)

            @pl.when(kk == pl.num_programs(2) - 1)
            def _():
                s_ref[...] = acc_ref[...].astype(s_ref.dtype)

        support = pl.pallas_call(
            support_kernel,
            out_shape=jax.ShapeDtypeStruct((n_cp, out_fp), cdtype),
            grid_spec=pltpu.PrefetchScalarGridSpec(
                num_scalar_prefetch=0,
                grid=(n_cp // tms, out_fp // tns, in_fp // tks),
                in_specs=[pl.BlockSpec((tms, tks), lambda i, j, kk: (i, kk)),
                          pl.BlockSpec((tks, tns), lambda i, j, kk: (kk, j))],
                out_specs=pl.BlockSpec((tms, tns), lambda i, j, kk: (i, j)),
                scratch_shapes=[pltpu.VMEM((tms, tns), jnp.float32)]),
            compiler_params=pltpu.CompilerParams(
                dimension_semantics=("parallel", "parallel", "arbitrary"),
                vmem_limit_bytes=budget),
            cost_estimate=pl.CostEstimate(
                flops=2 * n_cp * in_fp * out_fp,
                transcendentals=0,
                bytes_accessed=(n_cp * in_fp + in_fp * out_fp
                                + n_cp * out_fp) * itemsize),
        )(x_p, w_p)

        # ---- Path B pass 2: out = adj @ support (+ b), acc in out_ref ------
        s_resident = fits(adj_tile_b, out_tile_b, bias_b, s_res_b)
        # TODO(synk): also tile out_f here if 2*tk*out_fp ever exceeds the
        # budget (would re-stream adj once per out tile).

        def spmm_kernel(adj_ref, s_ref, *rest):
            if has_bias:
                b_ref, out_ref = rest
            else:
                (out_ref,) = rest
            k = pl.program_id(1)

            @pl.when(k == 0)
            def _():
                if has_bias:
                    out_ref[...] = jnp.broadcast_to(b_ref[...], out_ref.shape)
                else:
                    out_ref[...] = jnp.zeros_like(out_ref)

            if s_resident:   # whole support lives in VMEM; slice K slab here
                s_blk = s_ref[pl.ds(pl.multiple_of(k * tk, 128), tk), :]
            else:
                s_blk = s_ref[...]
            out_ref[...] += jnp.dot(adj_ref[...], s_blk,
                                    preferred_element_type=jnp.float32)

        s_spec = (pl.BlockSpec((n_cp, out_fp), lambda i, k: (0, 0))
                  if s_resident
                  else pl.BlockSpec((tk, out_fp), lambda i, k: (k, 0)))
        in_specs = [pl.BlockSpec((tm, tk), lambda i, k: (i, k)), s_spec]
        args = [adj_p, support]
        if has_bias:
            in_specs.append(pl.BlockSpec((1, out_fp), lambda i, k: (0, 0)))
            args.append(b_p)

        out_p = pl.pallas_call(
            spmm_kernel,
            out_shape=jax.ShapeDtypeStruct((n_rp, out_fp), jnp.float32),
            grid_spec=pltpu.PrefetchScalarGridSpec(
                num_scalar_prefetch=0,
                grid=grid,
                in_specs=in_specs,
                out_specs=pl.BlockSpec((tm, out_fp), lambda i, k: (i, 0))),
            compiler_params=cparams,
            cost_estimate=pl.CostEstimate(
                flops=2 * n_rp * n_cp * out_fp,
                transcendentals=0,
                bytes_accessed=(n_rp * n_cp + n_cp * out_fp) * itemsize
                               + n_rp * out_fp * 4),
        )(*args)

    return out_p[:n, :out_f]


def init_gcn_params(key, in_features, out_features, bias=True):
    """Matches reset_parameters(): U(-stdv, stdv), stdv = 1/sqrt(out_features)."""
    stdv = 1.0 / math.sqrt(out_features)
    kw, kb = jax.random.split(key)
    weight = jax.random.uniform(
        kw, (in_features, out_features), minval=-stdv, maxval=stdv,
        dtype=jnp.float32)
    b = (jax.random.uniform(kb, (out_features,), minval=-stdv, maxval=stdv,
                            dtype=jnp.float32)
         if bias else None)
    return weight, b


if __name__ == "__main__":
    key = jax.random.PRNGKey(0)
    k_x, k_adj, k_p, k_x2, k_p2 = jax.random.split(key, 5)

    # --- config 1: in_f < out_f -> fused (adj @ x) @ W path, with bias ------
    N, IN_F, OUT_F = 16, 8, 32
    x = jax.random.normal(k_x, (N, IN_F), dtype=jnp.float32)
    a_raw = (jax.random.uniform(k_adj, (N, N)) < 0.3).astype(jnp.float32)
    adj = a_raw + a_raw.T + jnp.eye(N, dtype=jnp.float32)
    adj = adj / jnp.maximum(adj.sum(axis=1, keepdims=True), 1.0)
    weight, bias = init_gcn_params(k_p, IN_F, OUT_F, bias=True)

    out = jax.block_until_ready(graph_convolution(x, weight, adj, bias))
    ref = adj @ (x @ weight) + bias
    assert out.shape == (N, OUT_F)
    assert jnp.allclose(out, ref, atol=2e-5, rtol=2e-5)

    # --- config 2: in_f > out_f -> support-first path, bias=None ------------
    N2, IN_F2, OUT_F2 = 20, 32, 8
    x2 = jax.random.normal(k_x2, (N2, IN_F2), dtype=jnp.float32)
    adj2 = jnp.eye(N2, dtype=jnp.float32) + 0.1
    w2, _ = init_gcn_params(k_p2, IN_F2, OUT_F2, bias=False)

    out2 = jax.block_until_ready(graph_convolution(x2, w2, adj2, None))
    ref2 = adj2 @ (x2 @ w2)
    assert out2.shape == (N2, OUT_F2)
    assert jnp.allclose(out2, ref2, atol=2e-5, rtol=2e-5)

    print("KERNEL_OK")
</pallas_src>

<mosaic_0001>
module attributes {stable_mosaic.version = 11 : i64} {
  func.func @kernel_a(%arg0: i32, %arg1: i32, %arg2: memref<16x128xf32, #tpu.memory_space<vmem>>, %arg3: memref<128x128xf32, #tpu.memory_space<vmem>>, %arg4: memref<128x128xf32, #tpu.memory_space<vmem>>, %arg5: memref<1x128xf32, #tpu.memory_space<vmem>>, %arg6: memref<16x128xf32, #tpu.memory_space<vmem>>, %arg7: memref<16x128xf32, #tpu.memory_space<vmem>>) attributes {dimension_semantics = [#tpu.dimension_semantics<parallel>, #tpu.dimension_semantics<arbitrary>], iteration_bounds = array<i64: 1, 1>, scalar_prefetch = 0 : i64, scratch_operands = 1 : i64, tpu.core_type = #tpu.core_type<tc>, window_params = [{transform_indices = @transform_0, window_bounds = array<i64: 16, 128>}, {pipeline_mode = #tpu.pipeline_mode<synchronous>, transform_indices = @transform_1, window_bounds = array<i64: 128, 128>}, {pipeline_mode = #tpu.pipeline_mode<synchronous>, transform_indices = @transform_2, window_bounds = array<i64: 128, 128>}, {pipeline_mode = #tpu.pipeline_mode<synchronous>, transform_indices = @transform_3, window_bounds = array<i64: 1, 128>}, {transform_indices = @transform_4, window_bounds = array<i64: 16, 128>}]} {
    %c0_i32 = arith.constant 0 : i32
    %0 = arith.cmpi eq, %arg1, %c0_i32 : i32
    %1 = arith.extui %0 : i1 to i32
    %c0_i32_0 = arith.constant 0 : i32
    %2 = arith.cmpi ne, %1, %c0_i32_0 : i32
    scf.if %2 {
      %cst_9 = arith.constant 0.000000e+00 : f32
      %15 = vector.broadcast %cst_9 : f32 to vector<16x128xf32>
      %c0_10 = arith.constant 0 : index
      %c0_11 = arith.constant 0 : index
      %16 = vector.load %arg7[%c0_10, %c0_11] : memref<16x128xf32, #tpu.memory_space<vmem>>, vector<16x128xf32>
      tpu.vector_store %arg7[%c0_10, %c0_11], %15 {strides = array<i32>} : memref<16x128xf32, #tpu.memory_space<vmem>>, vector<16x128xf32>,
    } else {
    }
    %c128_i32 = arith.constant 128 : i32
    %3 = arith.muli %arg1, %c128_i32 : i32
    %4 = tpu.assume_multiple %3, 128 : i32
    %5 = arith.index_cast %4 : i32 to index
    %c0 = arith.constant 0 : index
    %6 = vector.load %arg3[%5, %c0] : memref<128x128xf32, #tpu.memory_space<vmem>>, vector<128x128xf32>
    %c0_1 = arith.constant 0 : index
    %c0_2 = arith.constant 0 : index
    %7 = vector.load %arg7[%c0_1, %c0_2] : memref<16x128xf32, #tpu.memory_space<vmem>>, vector<16x128xf32>
    %c0_3 = arith.constant 0 : index
    %c0_4 = arith.constant 0 : index
    %8 = vector.load %arg2[%c0_3, %c0_4] : memref<16x128xf32, #tpu.memory_space<vmem>>, vector<16x128xf32>
    %cst = arith.constant dense<0.000000e+00> : vector<16x128xf32>
    %9 = tpu.matmul %8, %6, %cst {dimension_numbers = #tpu.dot_dimension_numbers<[1], [0], [0], [1], [0, 0, 1, 1], [], []>} : vector<16x128xf32>, vector<128x128xf32>, vector<16x128xf32> -> vector<16x128xf32>
    %10 = arith.addf %7, %9 : vector<16x128xf32>
    %c0_5 = arith.constant 0 : index
    %c0_6 = arith.constant 0 : index
    %11 = vector.load %arg7[%c0_5, %c0_6] : memref<16x128xf32, #tpu.memory_space<vmem>>, vector<16x128xf32>
    tpu.vector_store %arg7[%c0_5, %c0_6], %10 {strides = array<i32>} : memref<16x128xf32, #tpu.memory_space<vmem>>, vector<16x128xf32>,
    %c0_i32_7 = arith.constant 0 : i32
    %12 = arith.cmpi eq, %arg1, %c0_i32_7 : i32
    %13 = arith.extui %12 : i1 to i32
    %c0_i32_8 = arith.constant 0 : i32
    %14 = arith.cmpi ne, %13, %c0_i32_8 : i32
    scf.if %14 {
      %c0_9 = arith.constant 0 : index
      %c0_10 = arith.constant 0 : index
      %15 = vector.load %arg7[%c0_9, %c0_10] : memref<16x128xf32, #tpu.memory_space<vmem>>, vector<16x128xf32>
      %c0_11 = arith.constant 0 : index
      %c0_12 = arith.constant 0 : index
      %16 = vector.load %arg4[%c0_11, %c0_12] : memref<128x128xf32, #tpu.memory_space<vmem>>, vector<128x128xf32>
      %cst_13 = arith.constant dense<0.000000e+00> : vector<16x128xf32>
      %17 = tpu.matmul %15, %16, %cst_13 {dimension_numbers = #tpu.dot_dimension_numbers<[1], [0], [0], [1], [0, 0, 1, 1], [], []>} : vector<16x128xf32>, vector<128x128xf32>, vector<16x128xf32> -> vector<16x128xf32>
      %c0_14 = arith.constant 0 : index
      %c0_15 = arith.constant 0 : index
      %18 = vector.load %arg5[%c0_14, %c0_15] : memref<1x128xf32, #tpu.memory_space<vmem>>, vector<1x128xf32>
      %19 = vector.broadcast %18 : vector<1x128xf32> to vector<16x128xf32>
      %20 = arith.addf %17, %19 : vector<16x128xf32>
      %c0_16 = arith.constant 0 : index
      %c0_17 = arith.constant 0 : index
      %21 = vector.load %arg6[%c0_16, %c0_17] : memref<16x128xf32, #tpu.memory_space<vmem>>, vector<16x128xf32>
      tpu.vector_store %arg6[%c0_16, %c0_17], %20 {strides = array<i32>} : memref<16x128xf32, #tpu.memory_space<vmem>>, vector<16x128xf32>,
    } else {
    }
    return
  }
  func.func @transform_0(%arg0: i32, %arg1: i32) -> (i32, i32) {
    %c0_i32 = arith.constant 0 : i32
    return %arg0, %arg1 : i32, i32
  }
  func.func @transform_1(%arg0: i32, %arg1: i32) -> (i32, i32) {
    %c0_i32 = arith.constant 0 : i32
    %c0_i32_0 = arith.constant 0 : i32
    %c0_i32_1 = arith.constant 0 : i32
    return %c0_i32, %c0_i32_0 : i32, i32
  }
  func.func @transform_2(%arg0: i32, %arg1: i32) -> (i32, i32) {
    %c0_i32 = arith.constant 0 : i32
    %c0_i32_0 = arith.constant 0 : i32
    %c0_i32_1 = arith.constant 0 : i32
    return %c0_i32, %c0_i32_0 : i32, i32
  }
  func.func @transform_3(%arg0: i32, %arg1: i32) -> (i32, i32) {
    %c0_i32 = arith.constant 0 : i32
    %c0_i32_0 = arith.constant 0 : i32
    %c0_i32_1 = arith.constant 0 : i32
    return %c0_i32, %c0_i32_0 : i32, i32
  }
  func.func @transform_4(%arg0: i32, %arg1: i32) -> (i32, i32) {
    %c0_i32 = arith.constant 0 : i32
    %c0_i32_0 = arith.constant 0 : i32
    return %arg0, %c0_i32 : i32, i32
  }
}

</mosaic_0001>

<bundles_post_ra>
// kernel: tpu_custom_call.1
= control target key start
LH: loop header
LB: loop body
LE: loop exit
PB: predicated region body
PF: predicated region fallthrough
CT: control target
= control target key end

     0   :  { %9 = vsyncpa [#allocation4], 0  ;;  %s661_s0 = inlined_call_operand.hbm [shape: f32[16,128], index: 0, kind: input, shape index: {}]   ;;  %s662_s1 = inlined_call_operand.hbm [shape: f32[128,128], index: 1, kind: input, shape index: {}]   ;;  %s663_s2 = inlined_call_operand.hbm [shape: f32[128,128], index: 2, kind: input, shape index: {}]   ;;  %s664_s3 = inlined_call_operand.vmem [shape: f32[1,128], index: 3, kind: input, shape index: {}]   ;;  %s665_s4 = inlined_call_operand.hbm [shape: f32[16,128], index: 4, kind: output, shape index: {}]  }
   0x1   :  { %10 = vsyncpa [#allocation7], 0 }
   0x2   :  { %11 = vsyncpa [#allocation5], 0  ;;  %s560_s15 = smov [#allocation6]   ;;  %s561_s17 = smov [#allocation3]  }
   0x3   :  { %s29_s16 = sshll.u32 %s560_s15, 4  ;;  %s17_s18 = sshll.u32 %s561_s17, 4  ;;  %s30_s16 = int_to_ptr.vmem [resolvable:$true] %s29_s16  ;;  %s591_s18 = int_to_ptr.vmem [resolvable:$true] %s17_s18 }
   0x4   :  { %s466_s21 = scalar_lea.hbm %s662_s1, 2048 }
   0x5   :  { %p467_p0 = scmp.ne.s32.totalorder %s662_s1, %s466_s21  ;;  %p470_p1 = scmp.lt.u32.totalorder %s466_s21, %s662_s1 }
   0x7   :  { %p472_p2 = pnand %p470_p1, %p467_p0 }
   0x9   :  { %475 = shalt.err (!%p472_p2)
}
   0xa   :  { %s476_s26 = scalar_lea.vmem %s30_s16, 2048  ;;  %p481_p4 = scmp.lt.s32.totalorder %s30_s16, %s30_s16 }
   0xb   :  { %p477_p3 = scmp.ne.s32.totalorder %s30_s16, %s476_s26  ;;  %p482_p5 = scmp.lt.s32.totalorder %s476_s26, %s476_s26 }
   0xd   :  { %p483_p6 = por %p482_p5, %p481_p4 }
   0xf   :  { %p484_p7 = pnand %p483_p6, %p477_p3 }
  0x11   :  { %487 = shalt.err (!%p484_p7)
}
  0x12   :  { %s562_s27 = smov 128   ;;  %s563_s28 = smov 8  }
  0x13   :  { %35 = dma.hbm_to_vmem [thread:$0]  %s662_s1, 2048, %s30_s16, [#allocation7], %s562_s27, %s562_s27, %s563_s28  }
  0x14   :  { %s488_s7 = scalar_lea.hbm %s661_s0, 256 }
  0x15   :  { %p489_p8 = scmp.ne.s32.totalorder %s661_s0, %s488_s7  ;;  %p492_p9 = scmp.lt.u32.totalorder %s488_s7, %s661_s0 }
  0x17   :  { %p494_p10 = pnand %p492_p9, %p489_p8 }
  0x19   :  { %497 = shalt.err (!%p494_p10)
}
  0x1a   :  { %s498_s12 = scalar_lea.vmem %s591_s18, 256  ;;  %p503_p12 = scmp.lt.s32.totalorder %s591_s18, %s591_s18 }
  0x1b   :  { %p499_p11 = scmp.ne.s32.totalorder %s591_s18, %s498_s12  ;;  %p504_p13 = scmp.lt.s32.totalorder %s498_s12, %s498_s12 }
  0x1d   :  { %p505_p0 = por %p504_p13, %p503_p12 }
  0x1f   :  { %p506_p1 = pnand %p505_p0, %p499_p11 }
  0x21   :  { %509 = shalt.err (!%p506_p1)
}
  0x22   :  { %23 = dma.hbm_to_vmem [thread:$0]  %s661_s0, 256, %s591_s18, [#allocation4], %s562_s27, %s562_s27, %s563_s28  }
  0x23   :  { %s564_s14 = smov [#allocation8]   ;;  %s510_s19 = scalar_lea.hbm %s663_s2, 2048 }
  0x24   :  { %s41_s15 = sshll.u32 %s564_s14, 4  ;;  %p511_p2 = scmp.ne.s32.totalorder %s663_s2, %s510_s19  ;;  %s42_s15 = int_to_ptr.vmem [resolvable:$true] %s41_s15 }
  0x25   :  { %p514_p3 = scmp.lt.u32.totalorder %s510_s19, %s663_s2 }
  0x27   :  { %p516_p4 = pnand %p514_p3, %p511_p2 }
  0x29   :  { %519 = shalt.err (!%p516_p4)
}
  0x2a   :  { %s520_s24 = scalar_lea.vmem %s42_s15, 2048  ;;  %p525_p6 = scmp.lt.s32.totalorder %s42_s15, %s42_s15 }
  0x2b   :  { %p521_p5 = scmp.ne.s32.totalorder %s42_s15, %s520_s24  ;;  %p526_p7 = scmp.lt.s32.totalorder %s520_s24, %s520_s24 }
  0x2d   :  { %p527_p8 = por %p526_p7, %p525_p6 }
  0x2f   :  { %p528_p9 = pnand %p527_p8, %p521_p5 }
  0x31   :  { %531 = shalt.err (!%p528_p9)
}
  0x32   :  { %47 = dma.hbm_to_vmem [thread:$0]  %s663_s2, 2048, %s42_s15, [#allocation7], %s562_s27, %s562_s27, %s563_s28  }
  0x33   :  { %554 = dma.done.wait [#allocation4], 256  }
  0x34   :  { %555 = vsyncadd [#allocation4], 4294967040 }
  0x35   :  { %556 = dma.done.wait [#allocation7], 4096  }
  0x36   :  { %557 = vsyncadd [#allocation7], 4294963200  ;;  %v67_v0 = vld [vmem:[#allocation6] sm:$0xff]  ;;  %v68_v1 = vld [vmem:[#allocation6 + $0x8] sm:$0xff]  ;;  %s565_s26 = smov [#allocation9]  }
  0x37   :  { %v69_v2 = vld [vmem:[#allocation6 + $0x10] sm:$0xff]  ;;  %v396_v3 = vpack.c.bf16 %v68_v1, %v67_v0  ;;  %v70_v4 = vld [vmem:[#allocation6 + $0x18] sm:$0xff]  ;;  %v71_v6 = vld [vmem:[#allocation6 + $0x20] sm:$0xff]  ;;  %s276_s29 = sshll.u32 %s565_s26, 4  ;;  %s277_s29 = int_to_ptr.vmem [resolvable:$true] %s276_s29 }
  0x38   :  { %v400_v5 = vpack.c.bf16 %v70_v4, %v69_v2  ;;  %v72_v7 = vld [vmem:[#allocation6 + $0x28] sm:$0xff]  ;;  %v73_v9 = vld [vmem:[#allocation6 + $0x30] sm:$0xff]  ;;  %v74_v10 = vld [vmem:[#allocation6 + $0x38] sm:$0xff]  ;;  %s532_s30 = scalar_lea.vmem %s277_s29, 256  ;;  %p537_p11 = scmp.lt.s32.totalorder %s277_s29, %s277_s29 }
  0x39   :  { %397 = vmatprep.subr.bf16.mxu0 %v396_v3  ;;  %v404_v8 = vpack.c.bf16 %v72_v7, %v71_v6  ;;  %v85_v11 = vld [vmem:[#allocation3] sm:$0xff]  ;;  %v171_v12 = vld [vmem:[#allocation8] sm:$0xff]  ;;  %v172_v13 = vld [vmem:[#allocation8 + $0x8] sm:$0xff]  ;;  %v408_v20 = vpack.c.bf16 %v74_v10, %v73_v9  ;;  %p533_p10 = scmp.ne.s32.totalorder %s277_s29, %s532_s30  ;;  %p538_p12 = scmp.lt.s32.totalorder %s532_s30, %s532_s30 }
  0x3a   :  { %399 = vmatpush3.bf16.msra.mxu0 %v396_v3  ;;  %358 = vmatprep.mubr.f32.mxu0 %v85_v11  ;;  %v173_v14 = vld [vmem:[#allocation8 + $0x10] sm:$0xff]  ;;  %v428_v15 = vpack.c.bf16 %v172_v13, %v171_v12  ;;  %v174_v16 = vld [vmem:[#allocation8 + $0x18] sm:$0xff]  ;;  %v175_v18 = vld [vmem:[#allocation8 + $0x20] sm:$0xff] }
  0x3b   :  { %401 = vmatprep.subr.bf16.mxu0 %v400_v5  ;;  %v432_v17 = vpack.c.bf16 %v174_v16, %v173_v14  ;;  %v176_v19 = vld [vmem:[#allocation8 + $0x28] sm:$0xff]  ;;  %v75_v21 = vld [vmem:[#allocation6 + $0x40] sm:$0xff]  ;;  %v177_v24 = vld [vmem:[#allocation8 + $0x30] sm:$0xff]  ;;  %p539_p13 = por %p538_p12, %p537_p11 }
  0x3c   :  { %429 = vmatprep.subr.bf16.mxu1 %v428_v15  ;;  %v76_v22 = vld [vmem:[#allocation6 + $0x48] sm:$0xff]  ;;  %v436_v23 = vpack.c.bf16 %v176_v19, %v175_v18  ;;  %v178_v25 = vld [vmem:[#allocation8 + $0x38] sm:$0xff]  ;;  %v77_v27 = vld [vmem:[#allocation6 + $0x50] sm:$0xff] }
  0x3d   :  { %431 = vmatpush3.bf16.msra.mxu1 %v428_v15  ;;  %v412_v26 = vpack.c.bf16 %v76_v22, %v75_v21  ;;  %v78_v28 = vld [vmem:[#allocation6 + $0x58] sm:$0xff]  ;;  %v440_v29 = vpack.c.bf16 %v178_v25, %v177_v24  ;;  %v179_v30 = vld [vmem:[#allocation8 + $0x40] sm:$0xff]  ;;  %v180_v31 = vld [vmem:[#allocation8 + $0x48] sm:$0xff]  ;;  %p540_p0 = pnand %p539_p13, %p533_p10 }
  0x3e   :  { %403 = vmatpush3.bf16.msra.mxu0 %v400_v5  ;;  %433 = vmatprep.subr.bf16.mxu1 %v432_v17  ;;  %v416_v32 = vpack.c.bf16 %v78_v28, %v77_v27  ;;  %v79_v33 = vld [vmem:[#allocation6 + $0x60] sm:$0xff]  ;;  %v80_v34 = vld [vmem:[#allocation6 + $0x68] sm:$0xff]  ;;  %v444_v35 = vpack.c.bf16 %v180_v31, %v179_v30  ;;  %v181_v36 = vld [vmem:[#allocation8 + $0x50] sm:$0xff] }
  0x3f   :  { %405 = vmatprep.subr.bf16.mxu0 %v404_v8  ;;  %v182_v37 = vld [vmem:[#allocation8 + $0x58] sm:$0xff]  ;;  %v420_v38 = vpack.c.bf16 %v80_v34, %v79_v33  ;;  %v81_v39 = vld [vmem:[#allocation6 + $0x70] sm:$0xff]  ;;  %v183_v42 = vld [vmem:[#allocation8 + $0x60] sm:$0xff] }
  0x40   :  { %v82_v40 = vld [vmem:[#allocation6 + $0x78] sm:$0xff]  ;;  %v448_v41 = vpack.c.bf16 %v182_v37, %v181_v36  ;;  %v184_v43 = vld [vmem:[#allocation8 + $0x68] sm:$0xff]  ;;  %v185_v46 = vld [vmem:[#allocation8 + $0x70] sm:$0xff] }
  0x41   :  { %435 = vmatpush3.bf16.msra.mxu1 %v432_v17  ;;  %v424_v44 = vpack.c.bf16 %v82_v40, %v81_v39  ;;  %v452_v45 = vpack.c.bf16 %v184_v43, %v183_v42  ;;  %v186_v47 = vld [vmem:[#allocation8 + $0x78] sm:$0xff]  ;;  %v289_v52 = vld [vmem:[%s664_s3] ss:$0 sm:$0xff] }
  0x42   :  { %407 = vmatpush3.bf16.msra.mxu0 %v404_v8  ;;  %437 = vmatprep.subr.bf16.mxu1 %v436_v23  ;;  %v456_v48 = vpack.c.bf16 %v186_v47, %v185_v46  ;;  %v86_v49 = vld [vmem:[#allocation3 + $0x8] sm:$0xff] }
  0x43   :  { %409 = vmatprep.subr.bf16.mxu0 %v408_v20 }
  0x45   :  { %439 = vmatpush3.bf16.msra.mxu1 %v436_v23 }
  0x46   :  { %411 = vmatpush3.bf16.msra.mxu0 %v408_v20  ;;  %441 = vmatprep.subr.bf16.mxu1 %v440_v29 }
  0x47   :  { %413 = vmatprep.subr.bf16.mxu0 %v412_v26 }
  0x49   :  { %443 = vmatpush3.bf16.msra.mxu1 %v440_v29 }
  0x4a   :  { %415 = vmatpush3.bf16.msra.mxu0 %v412_v26  ;;  %445 = vmatprep.subr.bf16.mxu1 %v444_v35 }
  0x4b   :  { %417 = vmatprep.subr.bf16.mxu0 %v416_v32 }
  0x4d   :  { %447 = vmatpush3.bf16.msra.mxu1 %v444_v35 }
  0x4e   :  { %419 = vmatpush3.bf16.msra.mxu0 %v416_v32  ;;  %449 = vmatprep.subr.bf16.mxu1 %v448_v41 }
  0x4f   :  { %421 = vmatprep.subr.bf16.mxu0 %v420_v38 }
  0x51   :  { %451 = vmatpush3.bf16.msra.mxu1 %v448_v41 }
  0x52   :  { %423 = vmatpush3.bf16.msra.mxu0 %v420_v38  ;;  %453 = vmatprep.subr.bf16.mxu1 %v452_v45 }
  0x53   :  { %425 = vmatprep.subr.bf16.mxu0 %v424_v44 }
  0x55   :  { %455 = vmatpush3.bf16.msra.mxu1 %v452_v45 }
  0x56   :  { %427 = vmatpush3.bf16.msra.mxu0 %v424_v44  ;;  %457 = vmatprep.subr.bf16.mxu1 %v456_v48 }
  0x59   :  { %359 = vmatmul.mubr.f32.vlgmr.msra.gmra.mrb[0].mxu0 %v86_v49  ;;  %459 = vmatpush3.bf16.msra.mxu1 %v456_v48 }
 0x12c   :  { %v360_v50 = vpop.f32.mrb[0].mxu0 }
 0x12d   :  { %v153_v51 = vpop.f32.mrb[1].mxu0 }
 0x12e   :  { %393 = vmatprep.mubr.f32.mxu1 %v153_v51 }
 0x12f   :  { %394 = vmatmul.mubr.f32.vlgmr.msra.gmra.mrb[0].mxu1 %v360_v50 }
 0x202   :  { %v395_v53 = vpop.f32.mrb[0].mxu1 }
 0x203   :  { %v266_v54 = vadd.f32 %v395_v53, %v289_v52  ;;  %v260_v55 = vpop.f32.mrb[1].mxu1 }
 0x204   :  { %v261_v56 = vadd.f32 %v289_v52, %v260_v55 }
 0x205   :  { %270 = vst [vmem:[#allocation9 + $0x8] sm:$0xff] %v266_v54 }
 0x206   :  { %269 = vst [vmem:[#allocation9] sm:$0xff] %v261_v56 }
 0x207   :  { %543 = shalt.err (!%p540_p0)
}
 0x208   :  { %s544_s3 = scalar_lea.hbm %s665_s4, 256 }
 0x209   :  { %p545_p1 = scmp.ne.s32.totalorder %s665_s4, %s544_s3  ;;  %p548_p2 = scmp.lt.u32.totalorder %s544_s3, %s665_s4 }
 0x20b   :  { %p550_p3 = pnand %p548_p2, %p545_p1 }
 0x20d   :  { %553 = shalt.err (!%p550_p3)
}
 0x20e   :  { %282 = dma.vmem_to_hbm [thread:$0]  %s277_s29, 256, %s665_s4, [#allocation5], %s562_s27, %s562_s27, %s563_s28  }
 0x20f   :  { %558 = dma.done.wait [#allocation5], 256  }
 0x210   :  { %559 = vsyncadd [#allocation5], 4294967040 }
 0x211   :  { %286 = vsyncpa [#allocation4], 1 }
 0x212   :  { %287 = vsyncpa [#allocation7], 1 }
 0x213   :  { %288 = vsyncpa [#allocation5], 1 }

</bundles_post_ra>
